<compile_context>
chip_gen: v5e
topology: v5e:2x2
jax: 0.10.0
libtpu: 0.0.40
codegen_flags: <defaults>
</compile_context>

<pallas_src>
import jax
import jax.numpy as jnp
from jax.experimental import pallas as pl
from jax.experimental.pallas import tpu as pltpu

IN_SHAPE = (2, 4, 30, 384)          # [-1, -1, 30, 384] with dynamic dims = 2, 4
OUT_SHAPE = (2, 4, 5, 6, 12, 32)    # _unsafe_view target
LANES = 384                         # last dim of the input, 3 * 128 -> lane dense


def _copy_kernel(a_ref, o_ref):
    # Identity copy of the whole (rows, 384) slab resident in VMEM.
    o_ref[...] = a_ref[...]


@jax.jit
def unsafe_view_dynamic_expand(a: jax.Array) -> jax.Array:
    """Semantics of aten._unsafe_view(a, [2, 4, 5, 6, 12, 32])."""
    total = 1
    for d in OUT_SHAPE:
        total *= d
    assert a.size == total, "_unsafe_view requires matching element count"

    # Metadata-only flatten to a lane-dense 2-D slab: (240, 384).
    rows = a.size // LANES
    a2d = jnp.reshape(a, (rows, LANES))

    copied = pl.pallas_call(
        _copy_kernel,
        out_shape=jax.ShapeDtypeStruct((rows, LANES), a.dtype),
        # Gridless, whole-array VMEM blocks: one load DMA + one store DMA.
        in_specs=[pl.BlockSpec(memory_space=pltpu.MemorySpace.VMEM)],
        out_specs=pl.BlockSpec(memory_space=pltpu.MemorySpace.VMEM),
        # Output aliases the (temporary) flattened input buffer.
        input_output_aliases={0: 0},
    )(a2d)

    # The actual "view": pure metadata reshape to the rank-6 target shape.
    return jnp.reshape(copied, OUT_SHAPE)


if __name__ == "__main__":
    key = jax.random.PRNGKey(0)
    x = jax.random.normal(key, IN_SHAPE, dtype=jnp.float32)

    out = jax.block_until_ready(unsafe_view_dynamic_expand(x))

    # Reference semantics: _unsafe_view == reshape for contiguous inputs.
    ref = jnp.reshape(x, OUT_SHAPE)
    assert out.shape == OUT_SHAPE
    assert out.dtype == jnp.float32
    assert bool(jnp.all(out == ref))

    print("KERNEL_OK")
</pallas_src>

<mosaic_0001>
module attributes {stable_mosaic.version = 11 : i64} {
  func.func @_copy_kernel(%arg0: memref<240x384xf32, #tpu.memory_space<vmem>>, %arg1: memref<240x384xf32, #tpu.memory_space<vmem>>) attributes {dimension_semantics = [], scalar_prefetch = 0 : i64, scratch_operands = 0 : i64, tpu.core_type = #tpu.core_type<tc>} {
    %c0 = arith.constant 0 : index
    %c0_0 = arith.constant 0 : index
    %0 = vector.load %arg0[%c0, %c0_0] : memref<240x384xf32, #tpu.memory_space<vmem>>, vector<240x384xf32>
    %c0_1 = arith.constant 0 : index
    %c0_2 = arith.constant 0 : index
    %1 = vector.load %arg1[%c0_1, %c0_2] : memref<240x384xf32, #tpu.memory_space<vmem>>, vector<240x384xf32>
    tpu.vector_store %arg1[%c0_1, %c0_2], %0 {strides = array<i32>} : memref<240x384xf32, #tpu.memory_space<vmem>>, vector<240x384xf32>,
    return
  }
}

</mosaic_0001>

<bundles_post_ra>
// kernel: unsafe_view_dynamic_expand.1
= control target key start
LH: loop header
LB: loop body
LE: loop exit
PB: predicated region body
PF: predicated region fallthrough
CT: control target
= control target key end

     0   :  { %s742_s0 = inlined_call_operand.vmem [shape: f32[240,384], index: 0, kind: input, shape index: {}, may-alias: {0,1}]   ;;  %s743_s1 = inlined_call_operand.vmem [shape: f32[240,384], index: 1, kind: output, shape index: {}, may-alias: {0,1}]  }
   0x1   :  { %v8_v0 = vld [vmem:[%s742_s0] sm:$0xff]  ;;  %v9_v1 = vld [vmem:[%s742_s0 + $0x8] sm:$0xff]  ;;  %v10_v2 = vld [vmem:[%s742_s0 + $0x10] sm:$0xff] }
   0x2   :  { %98 = vst [vmem:[%s743_s1] sm:$0xff] %v8_v0 }
   0x9   :  { %v11_v3 = vld [vmem:[%s742_s0 + $0x18] sm:$0xff] }
   0xa   :  { %99 = vst [vmem:[%s743_s1 + $0x8] sm:$0xff] %v9_v1 }
  0x11   :  { %v12_v4 = vld [vmem:[%s742_s0 + $0x20] sm:$0xff] }
  0x12   :  { %100 = vst [vmem:[%s743_s1 + $0x10] sm:$0xff] %v10_v2 }
  0x19   :  { %v13_v5 = vld [vmem:[%s742_s0 + $0x28] sm:$0xff] }
  0x1a   :  { %101 = vst [vmem:[%s743_s1 + $0x18] sm:$0xff] %v11_v3 }
  0x21   :  { %v14_v6 = vld [vmem:[%s742_s0 + $0x30] sm:$0xff] }
  0x22   :  { %102 = vst [vmem:[%s743_s1 + $0x20] sm:$0xff] %v12_v4 }
  0x29   :  { %v15_v7 = vld [vmem:[%s742_s0 + $0x38] sm:$0xff] }
  0x2a   :  { %103 = vst [vmem:[%s743_s1 + $0x28] sm:$0xff] %v13_v5 }
  0x31   :  { %v16_v8 = vld [vmem:[%s742_s0 + $0x40] sm:$0xff] }
  0x32   :  { %104 = vst [vmem:[%s743_s1 + $0x30] sm:$0xff] %v14_v6 }
  0x39   :  { %v17_v9 = vld [vmem:[%s742_s0 + $0x48] sm:$0xff] }
  0x3a   :  { %105 = vst [vmem:[%s743_s1 + $0x38] sm:$0xff] %v15_v7 }
  0x41   :  { %v18_v10 = vld [vmem:[%s742_s0 + $0x50] sm:$0xff] }
  0x42   :  { %106 = vst [vmem:[%s743_s1 + $0x40] sm:$0xff] %v16_v8 }
  0x49   :  { %v19_v11 = vld [vmem:[%s742_s0 + $0x58] sm:$0xff] }
  0x4a   :  { %107 = vst [vmem:[%s743_s1 + $0x48] sm:$0xff] %v17_v9 }
  0x51   :  { %v20_v12 = vld [vmem:[%s742_s0 + $0x60] sm:$0xff] }
  0x52   :  { %108 = vst [vmem:[%s743_s1 + $0x50] sm:$0xff] %v18_v10 }
  0x59   :  { %v21_v13 = vld [vmem:[%s742_s0 + $0x68] sm:$0xff] }
  0x5a   :  { %109 = vst [vmem:[%s743_s1 + $0x58] sm:$0xff] %v19_v11 }
  0x61   :  { %v22_v14 = vld [vmem:[%s742_s0 + $0x70] sm:$0xff] }
  0x62   :  { %110 = vst [vmem:[%s743_s1 + $0x60] sm:$0xff] %v20_v12 }
  0x69   :  { %v23_v15 = vld [vmem:[%s742_s0 + $0x78] sm:$0xff] }
  0x6a   :  { %111 = vst [vmem:[%s743_s1 + $0x68] sm:$0xff] %v21_v13 }
  0x71   :  { %v24_v16 = vld [vmem:[%s742_s0 + $0x80] sm:$0xff] }
  0x72   :  { %112 = vst [vmem:[%s743_s1 + $0x70] sm:$0xff] %v22_v14 }
  0x79   :  { %v25_v17 = vld [vmem:[%s742_s0 + $0x88] sm:$0xff] }
  0x7a   :  { %113 = vst [vmem:[%s743_s1 + $0x78] sm:$0xff] %v23_v15 }
  0x81   :  { %v26_v18 = vld [vmem:[%s742_s0 + $0x90] sm:$0xff] }
  0x82   :  { %114 = vst [vmem:[%s743_s1 + $0x80] sm:$0xff] %v24_v16 }
  0x89   :  { %v27_v19 = vld [vmem:[%s742_s0 + $0x98] sm:$0xff] }
  0x8a   :  { %115 = vst [vmem:[%s743_s1 + $0x88] sm:$0xff] %v25_v17 }
  0x91   :  { %v28_v20 = vld [vmem:[%s742_s0 + $0xa0] sm:$0xff] }
  0x92   :  { %116 = vst [vmem:[%s743_s1 + $0x90] sm:$0xff] %v26_v18 }
  0x99   :  { %v29_v21 = vld [vmem:[%s742_s0 + $0xa8] sm:$0xff] }
  0x9a   :  { %117 = vst [vmem:[%s743_s1 + $0x98] sm:$0xff] %v27_v19 }
  0xa1   :  { %v30_v22 = vld [vmem:[%s742_s0 + $0xb0] sm:$0xff] }
  0xa2   :  { %118 = vst [vmem:[%s743_s1 + $0xa0] sm:$0xff] %v28_v20 }
  0xa9   :  { %v31_v23 = vld [vmem:[%s742_s0 + $0xb8] sm:$0xff] }
  0xaa   :  { %119 = vst [vmem:[%s743_s1 + $0xa8] sm:$0xff] %v29_v21 }
  0xb1   :  { %v32_v24 = vld [vmem:[%s742_s0 + $0xc0] sm:$0xff] }
  0xb2   :  { %120 = vst [vmem:[%s743_s1 + $0xb0] sm:$0xff] %v30_v22 }
  0xb9   :  { %v33_v25 = vld [vmem:[%s742_s0 + $0xc8] sm:$0xff] }
  0xba   :  { %121 = vst [vmem:[%s743_s1 + $0xb8] sm:$0xff] %v31_v23 }
  0xc1   :  { %v34_v26 = vld [vmem:[%s742_s0 + $0xd0] sm:$0xff] }
  0xc2   :  { %122 = vst [vmem:[%s743_s1 + $0xc0] sm:$0xff] %v32_v24 }
  0xc9   :  { %v35_v27 = vld [vmem:[%s742_s0 + $0xd8] sm:$0xff] }
  0xca   :  { %123 = vst [vmem:[%s743_s1 + $0xc8] sm:$0xff] %v33_v25 }
  0xd1   :  { %v36_v28 = vld [vmem:[%s742_s0 + $0xe0] sm:$0xff] }
  0xd2   :  { %124 = vst [vmem:[%s743_s1 + $0xd0] sm:$0xff] %v34_v26 }
  0xd9   :  { %v37_v29 = vld [vmem:[%s742_s0 + $0xe8] sm:$0xff] }
  0xda   :  { %125 = vst [vmem:[%s743_s1 + $0xd8] sm:$0xff] %v35_v27 }
  0xe1   :  { %v38_v30 = vld [vmem:[%s742_s0 + $0xf0] sm:$0xff] }
  0xe2   :  { %126 = vst [vmem:[%s743_s1 + $0xe0] sm:$0xff] %v36_v28 }
  0xe9   :  { %v39_v31 = vld [vmem:[%s742_s0 + $0xf8] sm:$0xff] }
  0xea   :  { %127 = vst [vmem:[%s743_s1 + $0xe8] sm:$0xff] %v37_v29 }
  0xf1   :  { %v40_v32 = vld [vmem:[%s742_s0 + $0x100] sm:$0xff] }
  0xf2   :  { %128 = vst [vmem:[%s743_s1 + $0xf0] sm:$0xff] %v38_v30 }
  0xf9   :  { %v41_v33 = vld [vmem:[%s742_s0 + $0x108] sm:$0xff] }
  0xfa   :  { %129 = vst [vmem:[%s743_s1 + $0xf8] sm:$0xff] %v39_v31 }
 0x101   :  { %v42_v34 = vld [vmem:[%s742_s0 + $0x110] sm:$0xff] }
 0x102   :  { %130 = vst [vmem:[%s743_s1 + $0x100] sm:$0xff] %v40_v32 }
 0x109   :  { %v43_v35 = vld [vmem:[%s742_s0 + $0x118] sm:$0xff] }
 0x10a   :  { %131 = vst [vmem:[%s743_s1 + $0x108] sm:$0xff] %v41_v33 }
 0x111   :  { %v44_v36 = vld [vmem:[%s742_s0 + $0x120] sm:$0xff] }
 0x112   :  { %132 = vst [vmem:[%s743_s1 + $0x110] sm:$0xff] %v42_v34 }
 0x119   :  { %v45_v37 = vld [vmem:[%s742_s0 + $0x128] sm:$0xff] }
 0x11a   :  { %133 = vst [vmem:[%s743_s1 + $0x118] sm:$0xff] %v43_v35 }
 0x121   :  { %v46_v38 = vld [vmem:[%s742_s0 + $0x130] sm:$0xff] }
 0x122   :  { %134 = vst [vmem:[%s743_s1 + $0x120] sm:$0xff] %v44_v36 }
 0x129   :  { %v47_v39 = vld [vmem:[%s742_s0 + $0x138] sm:$0xff] }
 0x12a   :  { %135 = vst [vmem:[%s743_s1 + $0x128] sm:$0xff] %v45_v37 }
 0x131   :  { %v48_v40 = vld [vmem:[%s742_s0 + $0x140] sm:$0xff] }
 0x132   :  { %136 = vst [vmem:[%s743_s1 + $0x130] sm:$0xff] %v46_v38 }
 0x139   :  { %v49_v41 = vld [vmem:[%s742_s0 + $0x148] sm:$0xff] }
 0x13a   :  { %137 = vst [vmem:[%s743_s1 + $0x138] sm:$0xff] %v47_v39 }
 0x141   :  { %v50_v42 = vld [vmem:[%s742_s0 + $0x150] sm:$0xff] }
 0x142   :  { %138 = vst [vmem:[%s743_s1 + $0x140] sm:$0xff] %v48_v40 }
 0x149   :  { %v51_v43 = vld [vmem:[%s742_s0 + $0x158] sm:$0xff] }
 0x14a   :  { %139 = vst [vmem:[%s743_s1 + $0x148] sm:$0xff] %v49_v41 }
 0x151   :  { %v52_v44 = vld [vmem:[%s742_s0 + $0x160] sm:$0xff] }
 0x152   :  { %140 = vst [vmem:[%s743_s1 + $0x150] sm:$0xff] %v50_v42 }
 0x159   :  { %v53_v45 = vld [vmem:[%s742_s0 + $0x168] sm:$0xff] }
 0x15a   :  { %141 = vst [vmem:[%s743_s1 + $0x158] sm:$0xff] %v51_v43 }
 0x161   :  { %v54_v46 = vld [vmem:[%s742_s0 + $0x170] sm:$0xff] }
 0x162   :  { %142 = vst [vmem:[%s743_s1 + $0x160] sm:$0xff] %v52_v44 }
 0x169   :  { %v55_v47 = vld [vmem:[%s742_s0 + $0x178] sm:$0xff] }
 0x16a   :  { %143 = vst [vmem:[%s743_s1 + $0x168] sm:$0xff] %v53_v45 }
 0x171   :  { %v56_v48 = vld [vmem:[%s742_s0 + $0x180] sm:$0xff] }
 0x172   :  { %144 = vst [vmem:[%s743_s1 + $0x170] sm:$0xff] %v54_v46 }
 0x179   :  { %v57_v49 = vld [vmem:[%s742_s0 + $0x188] sm:$0xff] }
 0x17a   :  { %145 = vst [vmem:[%s743_s1 + $0x178] sm:$0xff] %v55_v47 }
 0x181   :  { %v58_v50 = vld [vmem:[%s742_s0 + $0x190] sm:$0xff] }
 0x182   :  { %146 = vst [vmem:[%s743_s1 + $0x180] sm:$0xff] %v56_v48 }
 0x189   :  { %v59_v51 = vld [vmem:[%s742_s0 + $0x198] sm:$0xff] }
 0x18a   :  { %147 = vst [vmem:[%s743_s1 + $0x188] sm:$0xff] %v57_v49 }
 0x191   :  { %v60_v52 = vld [vmem:[%s742_s0 + $0x1a0] sm:$0xff] }
 0x192   :  { %148 = vst [vmem:[%s743_s1 + $0x190] sm:$0xff] %v58_v50 }
 0x199   :  { %v61_v53 = vld [vmem:[%s742_s0 + $0x1a8] sm:$0xff] }
 0x19a   :  { %149 = vst [vmem:[%s743_s1 + $0x198] sm:$0xff] %v59_v51 }
 0x1a1   :  { %v62_v54 = vld [vmem:[%s742_s0 + $0x1b0] sm:$0xff] }
 0x1a2   :  { %150 = vst [vmem:[%s743_s1 + $0x1a0] sm:$0xff] %v60_v52 }
 0x1a9   :  { %v63_v55 = vld [vmem:[%s742_s0 + $0x1b8] sm:$0xff] }
 0x1aa   :  { %151 = vst [vmem:[%s743_s1 + $0x1a8] sm:$0xff] %v61_v53 }
 0x1b1   :  { %v64_v56 = vld [vmem:[%s742_s0 + $0x1c0] sm:$0xff] }
 0x1b2   :  { %152 = vst [vmem:[%s743_s1 + $0x1b0] sm:$0xff] %v62_v54 }
 0x1b9   :  { %v65_v57 = vld [vmem:[%s742_s0 + $0x1c8] sm:$0xff] }
 0x1ba   :  { %153 = vst [vmem:[%s743_s1 + $0x1b8] sm:$0xff] %v63_v55 }
 0x1c1   :  { %v66_v58 = vld [vmem:[%s742_s0 + $0x1d0] sm:$0xff] }
 0x1c2   :  { %154 = vst [vmem:[%s743_s1 + $0x1c0] sm:$0xff] %v64_v56 }
 0x1c9   :  { %v67_v59 = vld [vmem:[%s742_s0 + $0x1d8] sm:$0xff] }
 0x1ca   :  { %155 = vst [vmem:[%s743_s1 + $0x1c8] sm:$0xff] %v65_v57 }
 0x1d1   :  { %v68_v60 = vld [vmem:[%s742_s0 + $0x1e0] sm:$0xff] }
 0x1d2   :  { %156 = vst [vmem:[%s743_s1 + $0x1d0] sm:$0xff] %v66_v58 }
 0x1d9   :  { %v69_v61 = vld [vmem:[%s742_s0 + $0x1e8] sm:$0xff] }
 0x1da   :  { %157 = vst [vmem:[%s743_s1 + $0x1d8] sm:$0xff] %v67_v59 }
 0x1e1   :  { %v70_v62 = vld [vmem:[%s742_s0 + $0x1f0] sm:$0xff] }
 0x1e2   :  { %158 = vst [vmem:[%s743_s1 + $0x1e0] sm:$0xff] %v68_v60 }
 0x1e9   :  { %v71_v63 = vld [vmem:[%s742_s0 + $0x1f8] sm:$0xff] }
 0x1ea   :  { %159 = vst [vmem:[%s743_s1 + $0x1e8] sm:$0xff] %v69_v61 }
 0x1f1   :  { %v72_v0 = vld [vmem:[%s742_s0 + $0x200] sm:$0xff] }
 0x1f2   :  { %160 = vst [vmem:[%s743_s1 + $0x1f0] sm:$0xff] %v70_v62 }
 0x1f9   :  { %v73_v1 = vld [vmem:[%s742_s0 + $0x208] sm:$0xff] }
 0x1fa   :  { %161 = vst [vmem:[%s743_s1 + $0x1f8] sm:$0xff] %v71_v63 }
 0x201   :  { %v74_v2 = vld [vmem:[%s742_s0 + $0x210] sm:$0xff] }
 0x202   :  { %162 = vst [vmem:[%s743_s1 + $0x200] sm:$0xff] %v72_v0 }
 0x209   :  { %v75_v3 = vld [vmem:[%s742_s0 + $0x218] sm:$0xff] }
 0x20a   :  { %163 = vst [vmem:[%s743_s1 + $0x208] sm:$0xff] %v73_v1 }
 0x211   :  { %v76_v4 = vld [vmem:[%s742_s0 + $0x220] sm:$0xff] }
 0x212   :  { %164 = vst [vmem:[%s743_s1 + $0x210] sm:$0xff] %v74_v2 }
 0x219   :  { %v77_v5 = vld [vmem:[%s742_s0 + $0x228] sm:$0xff] }
 0x21a   :  { %165 = vst [vmem:[%s743_s1 + $0x218] sm:$0xff] %v75_v3 }
 0x221   :  { %v78_v6 = vld [vmem:[%s742_s0 + $0x230] sm:$0xff] }
 0x222   :  { %166 = vst [vmem:[%s743_s1 + $0x220] sm:$0xff] %v76_v4 }
 0x229   :  { %v79_v7 = vld [vmem:[%s742_s0 + $0x238] sm:$0xff] }
 0x22a   :  { %167 = vst [vmem:[%s743_s1 + $0x228] sm:$0xff] %v77_v5 }
 0x231   :  { %v80_v8 = vld [vmem:[%s742_s0 + $0x240] sm:$0xff] }
 0x232   :  { %168 = vst [vmem:[%s743_s1 + $0x230] sm:$0xff] %v78_v6 }
 0x239   :  { %v81_v9 = vld [vmem:[%s742_s0 + $0x248] sm:$0xff] }
 0x23a   :  { %169 = vst [vmem:[%s743_s1 + $0x238] sm:$0xff] %v79_v7 }
 0x241   :  { %v82_v10 = vld [vmem:[%s742_s0 + $0x250] sm:$0xff] }
 0x242   :  { %170 = vst [vmem:[%s743_s1 + $0x240] sm:$0xff] %v80_v8 }
 0x249   :  { %v83_v11 = vld [vmem:[%s742_s0 + $0x258] sm:$0xff] }
 0x24a   :  { %171 = vst [vmem:[%s743_s1 + $0x248] sm:$0xff] %v81_v9 }
 0x251   :  { %v84_v12 = vld [vmem:[%s742_s0 + $0x260] sm:$0xff] }
 0x252   :  { %172 = vst [vmem:[%s743_s1 + $0x250] sm:$0xff] %v82_v10 }
 0x259   :  { %v85_v13 = vld [vmem:[%s742_s0 + $0x268] sm:$0xff] }
 0x25a   :  { %173 = vst [vmem:[%s743_s1 + $0x258] sm:$0xff] %v83_v11 }
 0x261   :  { %v86_v14 = vld [vmem:[%s742_s0 + $0x270] sm:$0xff] }
 0x262   :  { %174 = vst [vmem:[%s743_s1 + $0x260] sm:$0xff] %v84_v12 }
 0x269   :  { %v87_v15 = vld [vmem:[%s742_s0 + $0x278] sm:$0xff] }
 0x26a   :  { %175 = vst [vmem:[%s743_s1 + $0x268] sm:$0xff] %v85_v13 }
 0x271   :  { %v88_v16 = vld [vmem:[%s742_s0 + $0x280] sm:$0xff] }
 0x272   :  { %176 = vst [vmem:[%s743_s1 + $0x270] sm:$0xff] %v86_v14 }
 0x279   :  { %v89_v17 = vld [vmem:[%s742_s0 + $0x288] sm:$0xff] }
 0x27a   :  { %177 = vst [vmem:[%s743_s1 + $0x278] sm:$0xff] %v87_v15 }
 0x281   :  { %v90_v18 = vld [vmem:[%s742_s0 + $0x290] sm:$0xff] }
 0x282   :  { %178 = vst [vmem:[%s743_s1 + $0x280] sm:$0xff] %v88_v16 }
 0x289   :  { %v91_v19 = vld [vmem:[%s742_s0 + $0x298] sm:$0xff] }
 0x28a   :  { %179 = vst [vmem:[%s743_s1 + $0x288] sm:$0xff] %v89_v17 }
 0x291   :  { %v92_v20 = vld [vmem:[%s742_s0 + $0x2a0] sm:$0xff] }
 0x292   :  { %180 = vst [vmem:[%s743_s1 + $0x290] sm:$0xff] %v90_v18 }
 0x299   :  { %v93_v21 = vld [vmem:[%s742_s0 + $0x2a8] sm:$0xff] }
 0x29a   :  { %181 = vst [vmem:[%s743_s1 + $0x298] sm:$0xff] %v91_v19 }
 0x2a1   :  { %v94_v22 = vld [vmem:[%s742_s0 + $0x2b0] sm:$0xff] }
 0x2a2   :  { %182 = vst [vmem:[%s743_s1 + $0x2a0] sm:$0xff] %v92_v20 }
 0x2a9   :  { %v95_v23 = vld [vmem:[%s742_s0 + $0x2b8] sm:$0xff] }
 0x2aa   :  { %183 = vst [vmem:[%s743_s1 + $0x2a8] sm:$0xff] %v93_v21 }
 0x2b1   :  { %v96_v24 = vld [vmem:[%s742_s0 + $0x2c0] sm:$0xff] }
 0x2b2   :  { %184 = vst [vmem:[%s743_s1 + $0x2b0] sm:$0xff] %v94_v22 }
 0x2b9   :  { %v97_v25 = vld [vmem:[%s742_s0 + $0x2c8] sm:$0xff] }
 0x2ba   :  { %185 = vst [vmem:[%s743_s1 + $0x2b8] sm:$0xff] %v95_v23 }
 0x2bb   :  { %186 = vst [vmem:[%s743_s1 + $0x2c0] sm:$0xff] %v96_v24 }
 0x2bc   :  { %187 = vst [vmem:[%s743_s1 + $0x2c8] sm:$0xff] %v97_v25 }

</bundles_post_ra>
